<compile_context>
chip_gen: v5e
topology: v5e:2x2
jax: 0.10.0
libtpu: 0.0.40
codegen_flags: <defaults>
</compile_context>

<pallas_src>
import functools
import math

import jax
import jax.numpy as jnp
from jax import lax
from jax.experimental import pallas as pl
from jax.experimental.pallas import tpu as pltpu


def _round_up(x, m):
    return ((x + m - 1) // m) * m


def _self_attn_kernel(gamma_ref, x_full_ref, xq_ref, wcat_ref, bcat_ref,
                      o_ref, proj_scr, kt_scr, *, red_p, hw_real):
    # Per grid step (n, qi):
    #   gamma_ref : (1,)          f32  SMEM
    #   x_full_ref: (1, C, HWp)   f32  (whole sample; block index constant over qi)
    #   xq_ref    : (1, C, Tq)    f32  (query slab, for the residual)
    #   wcat_ref  : (R, C)   R = 2*red_p + C, rows = [q*inv_scale | k | v]
    #   bcat_ref  : (R, 1)
    #   o_ref     : (1, C, Tq)
    #   proj_scr  : (R, HWp)      f32  VMEM scratch (per-sample q/k/v projections)
    #   kt_scr    : (HWp, red_p)  f32  VMEM scratch (k^T)
    qi = pl.program_id(1)
    C = o_ref.shape[1]
    tq = o_ref.shape[2]
    hwp = proj_scr.shape[1]

    # ---- once per sample: fused q/k/v projection + small k transpose ----
    @pl.when(qi == 0)
    def _project():
        xs = x_full_ref[0]                                            # (C, HWp)
        proj_scr[...] = (
            jnp.dot(wcat_ref[...], xs, preferred_element_type=jnp.float32)
            + bcat_ref[...])                                          # (R, HWp)
        # k^T: tiny (red_p, HWp) -> (HWp, red_p) transpose, once per sample.
        kt_scr[...] = jnp.transpose(proj_scr[pl.ds(red_p, red_p), :])

    # ---- per query block ----
    q_start = pl.multiple_of(qi * tq, 128)
    q_blk = proj_scr[pl.ds(0, red_p), pl.ds(q_start, tq)]             # (red_p, Tq)

    # logits^T[j, i] = sum_d k[d, j] * q_scaled[d, i]   (canonical MXU matmul)
    logits_t = jnp.dot(kt_scr[...], q_blk,
                       preferred_element_type=jnp.float32)            # (HWp, Tq)

    if hwp > hw_real:  # static branch: only present when HW was padded to 128
        key_ids = lax.broadcasted_iota(jnp.int32, (hwp, 1), 0)
        logits_t = jnp.where(key_ids < hw_real, logits_t, jnp.float32(-1e30))

    # numerically stable softmax over the key axis (axis 0 of logits^T)
    m = jnp.max(logits_t, axis=0, keepdims=True)                      # (1, Tq)
    e = jnp.exp(logits_t - m)
    l = jnp.sum(e, axis=0, keepdims=True)                             # (1, Tq)
    attn_t = e * pl.reciprocal(l, approx=True)                        # (HWp, Tq)

    # out[c, i] = sum_j v[c, j] * attn^T[j, i]          (canonical MXU matmul)
    v = proj_scr[pl.ds(2 * red_p, C), :]                              # (C, HWp)
    out_blk = jnp.dot(v, attn_t, preferred_element_type=jnp.float32)  # (C, Tq)

    o_ref[0] = (gamma_ref[0] * out_blk + xq_ref[0]).astype(o_ref.dtype)


def self_attention(x, wq, bq, wk, bk, wv, bv, gamma, *, tq=None):
    """x: (N, C, H, W) f32.  wq/wk: (C//8, C), bq/bk: (C//8,), wv: (C, C),
    bv: (C,), gamma: scalar.  tq: query-block width (multiple of 128)."""
    N, C, H, W = x.shape
    HW = H * W
    red = wq.shape[0]
    red_p = _round_up(red, 8)
    R = 2 * red_p + C

    hwp = _round_up(HW, 128)
    if tq is None:
        tq = 512 if hwp % 512 == 0 else (256 if hwp % 256 == 0 else 128)
    tq = min(tq, hwp)
    if hwp % tq != 0:
        raise ValueError(f"tq={tq} must divide padded HW={hwp}")
    n_qb = hwp // tq

    inv_scale = 1.0 / math.sqrt(red)

    # Fused projection weights: rows [0:red] = scaled query, [red_p:red_p+red] = key,
    # [2*red_p:] = value.  Zero rows keep slices 8-sublane aligned and add nothing.
    wcat = jnp.zeros((R, C), jnp.float32)
    wcat = wcat.at[:red, :].set(wq.astype(jnp.float32) * inv_scale)
    wcat = wcat.at[red_p:red_p + red, :].set(wk.astype(jnp.float32))
    wcat = wcat.at[2 * red_p:, :].set(wv.astype(jnp.float32))
    bcat = jnp.zeros((R,), jnp.float32)
    bcat = bcat.at[:red].set(bq.astype(jnp.float32) * inv_scale)
    bcat = bcat.at[red_p:red_p + red].set(bk.astype(jnp.float32))
    bcat = bcat.at[2 * red_p:].set(bv.astype(jnp.float32))
    bcat = bcat.reshape(R, 1)

    xf = x.reshape(N, C, HW)
    if hwp != HW:
        xf = jnp.pad(xf, ((0, 0), (0, 0), (0, hwp - HW)))

    gamma_arr = jnp.asarray(gamma, jnp.float32).reshape(1)

    # Generation-aware VMEM limit (v5e/v6e: 128 MiB physical, v7x: 64 MiB).
    try:
        vmem_cap = pltpu.get_tpu_info().vmem_capacity_bytes
    except Exception:
        vmem_cap = 64 * 1024 * 1024
    vmem_limit = min(int(vmem_cap * 0.85), 100 * 1024 * 1024)

    kernel = functools.partial(_self_attn_kernel, red_p=red_p, hw_real=HW)

    out = pl.pallas_call(
        kernel,
        out_shape=jax.ShapeDtypeStruct((N, C, hwp), x.dtype),
        grid=(N, n_qb),
        in_specs=[
            pl.BlockSpec(memory_space=pltpu.MemorySpace.SMEM),    # gamma (scalar)
            pl.BlockSpec((1, C, hwp), lambda n, qi: (n, 0, 0)),   # x, full sample
            pl.BlockSpec((1, C, tq), lambda n, qi: (n, 0, qi)),   # x, query slab
            pl.BlockSpec((R, C), lambda n, qi: (0, 0)),           # fused weights
            pl.BlockSpec((R, 1), lambda n, qi: (0, 0)),           # fused biases
        ],
        out_specs=pl.BlockSpec((1, C, tq), lambda n, qi: (n, 0, qi)),
        scratch_shapes=[
            pltpu.VMEM((R, hwp), jnp.float32),                    # q/k/v projections
            pltpu.VMEM((hwp, red_p), jnp.float32),                # k^T
        ],
        compiler_params=pltpu.CompilerParams(
            # Batch is parallel (megacore split); the query-block axis carries the
            # per-sample projection scratch, so it must stay "arbitrary".
            dimension_semantics=("parallel", "arbitrary"),
            vmem_limit_bytes=vmem_limit),
    )(gamma_arr, xf, xf, wcat, bcat)

    if hwp != HW:
        out = out[:, :, :HW]
    return out.reshape(N, C, H, W)


def _reference(x, wq, bq, wk, bk, wv, bv, gamma):
    N, C, H, W = x.shape
    red = wq.shape[0]
    xf = x.reshape(N, C, H * W)
    q = jnp.einsum('rc,ncs->nrs', wq, xf, precision='highest') + bq[None, :, None]
    k = jnp.einsum('rc,ncs->nrs', wk, xf, precision='highest') + bk[None, :, None]
    v = jnp.einsum('oc,ncs->nos', wv, xf, precision='highest') + bv[None, :, None]
    logits = jnp.einsum('nri,nrj->nij', q, k,
                        precision='highest') / math.sqrt(red)
    attn = jax.nn.softmax(logits, axis=-1)
    out = jnp.einsum('ncj,nij->nci', v, attn, precision='highest')
    return (gamma * out + xf).reshape(N, C, H, W)


if __name__ == "__main__":
    # Small shapes consistent with the module: C must be divisible by 8.
    # HW = 256 -> two 128-wide query blocks so the tiled path is exercised.
    N, C, H, W = 2, 32, 16, 16
    red = C // 8

    key = jax.random.PRNGKey(0)
    kx, kq, kbq, kk, kbk, kv, kbv = jax.random.split(key, 7)

    x = jax.random.normal(kx, (N, C, H, W), dtype=jnp.float32)
    bound = 1.0 / (C ** 0.5)
    wq = jax.random.uniform(kq,  (red, C), jnp.float32, -bound, bound)
    bq = jax.random.uniform(kbq, (red,),   jnp.float32, -bound, bound)
    wk = jax.random.uniform(kk,  (red, C), jnp.float32, -bound, bound)
    bk = jax.random.uniform(kbk, (red,),   jnp.float32, -bound, bound)
    wv = jax.random.uniform(kv,  (C, C),   jnp.float32, -bound, bound)
    bv = jax.random.uniform(kbv, (C,),     jnp.float32, -bound, bound)
    # PyTorch initializes gamma = 0 (output == input); use a nonzero value so
    # the attention path is actually exercised by this check.
    gamma = 0.5

    out = self_attention(x, wq, bq, wk, bk, wv, bv, gamma, tq=128)
    jax.block_until_ready(out)

    ref = _reference(x, wq, bq, wk, bk, wv, bv, gamma)
    assert out.shape == (N, C, H, W)
    err = jnp.max(jnp.abs(out - ref))
    assert jnp.allclose(out, ref, atol=1e-3, rtol=1e-3), f"mismatch, max err={err}"

    print("KERNEL_OK")
</pallas_src>

<mosaic_0001>
module attributes {stable_mosaic.version = 11 : i64} {
  func.func @_self_attn_kernel(%arg0: i32, %arg1: i32, %arg2: memref<1xf32, #tpu.memory_space<smem>>, %arg3: memref<1x32x256xf32, #tpu.memory_space<vmem>>, %arg4: memref<1x32x128xf32, #tpu.memory_space<vmem>>, %arg5: memref<48x32xf32, #tpu.memory_space<vmem>>, %arg6: memref<48x1xf32, #tpu.memory_space<vmem>>, %arg7: memref<1x32x128xf32, #tpu.memory_space<vmem>>, %arg8: memref<48x256xf32, #tpu.memory_space<vmem>>, %arg9: memref<256x8xf32, #tpu.memory_space<vmem>>) attributes {dimension_semantics = [#tpu.dimension_semantics<parallel>, #tpu.dimension_semantics<arbitrary>], iteration_bounds = array<i64: 2, 2>, scalar_prefetch = 0 : i64, scratch_operands = 2 : i64, tpu.core_type = #tpu.core_type<tc>, window_params = [{transform_indices = @transform_0, window_bounds = array<i64: 1>}, {transform_indices = @transform_1, window_bounds = array<i64: 1, 32, 256>}, {transform_indices = @transform_2, window_bounds = array<i64: 1, 32, 128>}, {pipeline_mode = #tpu.pipeline_mode<synchronous>, transform_indices = @transform_3, window_bounds = array<i64: 48, 32>}, {pipeline_mode = #tpu.pipeline_mode<synchronous>, transform_indices = @transform_4, window_bounds = array<i64: 48, 1>}, {transform_indices = @transform_5, window_bounds = array<i64: 1, 32, 128>}]} {
    %c0_i32 = arith.constant 0 : i32
    %0 = arith.cmpi eq, %arg1, %c0_i32 : i32
    %1 = arith.extui %0 : i1 to i32
    %c0_i32_0 = arith.constant 0 : i32
    %2 = arith.cmpi ne, %1, %c0_i32_0 : i32
    scf.if %2 {
      %c0_14 = arith.constant 0 : index
      %c0_15 = arith.constant 0 : index
      %c0_16 = arith.constant 0 : index
      %30 = vector.load %arg3[%c0_14, %c0_15, %c0_16] : memref<1x32x256xf32, #tpu.memory_space<vmem>>, vector<1x32x256xf32>
      %31 = vector.shape_cast %30 : vector<1x32x256xf32> to vector<32x256xf32>
      %c0_17 = arith.constant 0 : index
      %c0_18 = arith.constant 0 : index
      %32 = vector.load %arg5[%c0_17, %c0_18] : memref<48x32xf32, #tpu.memory_space<vmem>>, vector<48x32xf32>
      %cst_19 = arith.constant dense<0.000000e+00> : vector<48x256xf32>
      %33 = tpu.matmul %32, %31, %cst_19 {dimension_numbers = #tpu.dot_dimension_numbers<[1], [0], [0], [1], [0, 0, 1, 1], [], []>} : vector<48x32xf32>, vector<32x256xf32>, vector<48x256xf32> -> vector<48x256xf32>
      %c0_20 = arith.constant 0 : index
      %c0_21 = arith.constant 0 : index
      %34 = vector.load %arg6[%c0_20, %c0_21] : memref<48x1xf32, #tpu.memory_space<vmem>>, vector<48x1xf32>
      %35 = vector.broadcast %34 : vector<48x1xf32> to vector<48x256xf32>
      %36 = arith.addf %33, %35 : vector<48x256xf32>
      %c0_22 = arith.constant 0 : index
      %c0_23 = arith.constant 0 : index
      %37 = vector.load %arg8[%c0_22, %c0_23] : memref<48x256xf32, #tpu.memory_space<vmem>>, vector<48x256xf32>
      tpu.vector_store %arg8[%c0_22, %c0_23], %36 {strides = array<i32>} : memref<48x256xf32, #tpu.memory_space<vmem>>, vector<48x256xf32>,
      %c8 = arith.constant 8 : index
      %c0_24 = arith.constant 0 : index
      %38 = vector.load %arg8[%c8, %c0_24] : memref<48x256xf32, #tpu.memory_space<vmem>>, vector<8x256xf32>
      %39 = tpu.transpose %38, [1, 0] : vector<8x256xf32> -> vector<256x8xf32>
      %c0_25 = arith.constant 0 : index
      %c0_26 = arith.constant 0 : index
      %40 = vector.load %arg9[%c0_25, %c0_26] : memref<256x8xf32, #tpu.memory_space<vmem>>, vector<256x8xf32>
      tpu.vector_store %arg9[%c0_25, %c0_26], %39 {strides = array<i32>} : memref<256x8xf32, #tpu.memory_space<vmem>>, vector<256x8xf32>,
    } else {
    }
    %c128_i32 = arith.constant 128 : i32
    %3 = arith.muli %arg1, %c128_i32 : i32
    %4 = tpu.assume_multiple %3, 128 : i32
    %c0 = arith.constant 0 : index
    %5 = arith.index_cast %4 : i32 to index
    %6 = vector.load %arg8[%c0, %5] : memref<48x256xf32, #tpu.memory_space<vmem>>, vector<8x128xf32>
    %c0_1 = arith.constant 0 : index
    %c0_2 = arith.constant 0 : index
    %7 = vector.load %arg9[%c0_1, %c0_2] : memref<256x8xf32, #tpu.memory_space<vmem>>, vector<256x8xf32>
    %cst = arith.constant dense<0.000000e+00> : vector<256x128xf32>
    %8 = tpu.matmul %7, %6, %cst {dimension_numbers = #tpu.dot_dimension_numbers<[1], [0], [0], [1], [0, 0, 1, 1], [], []>} : vector<256x8xf32>, vector<8x128xf32>, vector<256x128xf32> -> vector<256x128xf32>
    %cst_3 = arith.constant dense<0xFF800000> : vector<128xf32>
    %9 = vector.multi_reduction <maximumf>, %8, %cst_3 [0] : vector<256x128xf32> to vector<128xf32>
    %10 = vector.shape_cast %9 : vector<128xf32> to vector<1x128xf32>
    %11 = vector.broadcast %10 : vector<1x128xf32> to vector<256x128xf32>
    %12 = arith.subf %8, %11 : vector<256x128xf32>
    %13 = math.exp %12 : vector<256x128xf32>
    %cst_4 = arith.constant dense<0.000000e+00> : vector<128xf32>
    %14 = vector.multi_reduction <add>, %13, %cst_4 [0] : vector<256x128xf32> to vector<128xf32>
    %15 = vector.shape_cast %14 : vector<128xf32> to vector<1x128xf32>
    %16 = tpu.reciprocal %15 {approx = true} : vector<1x128xf32> -> vector<1x128xf32>
    %17 = vector.broadcast %16 : vector<1x128xf32> to vector<256x128xf32>
    %18 = arith.mulf %13, %17 : vector<256x128xf32>
    %c16 = arith.constant 16 : index
    %c0_5 = arith.constant 0 : index
    %19 = vector.load %arg8[%c16, %c0_5] : memref<48x256xf32, #tpu.memory_space<vmem>>, vector<32x256xf32>
    %cst_6 = arith.constant dense<0.000000e+00> : vector<32x128xf32>
    %20 = tpu.matmul %19, %18, %cst_6 {dimension_numbers = #tpu.dot_dimension_numbers<[1], [0], [0], [1], [0, 0, 1, 1], [], []>} : vector<32x256xf32>, vector<256x128xf32>, vector<32x128xf32> -> vector<32x128xf32>
    %c0_7 = arith.constant 0 : index
    %21 = memref.load %arg2[%c0_7] : memref<1xf32, #tpu.memory_space<smem>>
    %22 = vector.broadcast %21 : f32 to vector<32x128xf32>
    %23 = arith.mulf %22, %20 : vector<32x128xf32>
    %c0_8 = arith.constant 0 : index
    %c0_9 = arith.constant 0 : index
    %c0_10 = arith.constant 0 : index
    %24 = vector.load %arg4[%c0_8, %c0_9, %c0_10] : memref<1x32x128xf32, #tpu.memory_space<vmem>>, vector<1x32x128xf32>
    %25 = vector.shape_cast %24 : vector<1x32x128xf32> to vector<32x128xf32>
    %26 = arith.addf %23, %25 : vector<32x128xf32>
    %c0_11 = arith.constant 0 : index
    %c0_12 = arith.constant 0 : index
    %c0_13 = arith.constant 0 : index
    %27 = vector.load %arg7[%c0_11, %c0_12, %c0_13] : memref<1x32x128xf32, #tpu.memory_space<vmem>>, vector<1x32x128xf32>
    %28 = vector.shape_cast %27 : vector<1x32x128xf32> to vector<32x128xf32>
    %29 = vector.shape_cast %26 : vector<32x128xf32> to vector<1x32x128xf32>
    tpu.vector_store %arg7[%c0_11, %c0_12, %c0_13], %29 {strides = array<i32>} : memref<1x32x128xf32, #tpu.memory_space<vmem>>, vector<1x32x128xf32>,
    return
  }
  func.func @transform_0(%arg0: i32, %arg1: i32) -> i32 {
    %c0_i32 = arith.constant 0 : i32
    %c0_i32_0 = arith.constant 0 : i32
    return %c0_i32 : i32
  }
  func.func @transform_1(%arg0: i32, %arg1: i32) -> (i32, i32, i32) {
    %c0_i32 = arith.constant 0 : i32
    %c0_i32_0 = arith.constant 0 : i32
    %c0_i32_1 = arith.constant 0 : i32
    return %arg0, %c0_i32, %c0_i32_0 : i32, i32, i32
  }
  func.func @transform_2(%arg0: i32, %arg1: i32) -> (i32, i32, i32) {
    %c0_i32 = arith.constant 0 : i32
    %c0_i32_0 = arith.constant 0 : i32
    return %arg0, %c0_i32, %arg1 : i32, i32, i32
  }
  func.func @transform_3(%arg0: i32, %arg1: i32) -> (i32, i32) {
    %c0_i32 = arith.constant 0 : i32
    %c0_i32_0 = arith.constant 0 : i32
    %c0_i32_1 = arith.constant 0 : i32
    return %c0_i32, %c0_i32_0 : i32, i32
  }
  func.func @transform_4(%arg0: i32, %arg1: i32) -> (i32, i32) {
    %c0_i32 = arith.constant 0 : i32
    %c0_i32_0 = arith.constant 0 : i32
    %c0_i32_1 = arith.constant 0 : i32
    return %c0_i32, %c0_i32_0 : i32, i32
  }
  func.func @transform_5(%arg0: i32, %arg1: i32) -> (i32, i32, i32) {
    %c0_i32 = arith.constant 0 : i32
    %c0_i32_0 = arith.constant 0 : i32
    return %arg0, %c0_i32, %arg1 : i32, i32, i32
  }
}

</mosaic_0001>

<bundles_post_ra>
// kernel: tpu_custom_call.1
= control target key start
LH: loop header
LB: loop body
LE: loop exit
PB: predicated region body
PF: predicated region fallthrough
CT: control target
= control target key end

     0   :  { %s2124_s0 = inlined_call_operand.<no memory space> [shape: f32[1], index: 0, kind: input, shape index: {}]   ;;  %s2125_s1 = inlined_call_operand.vmem [shape: f32[2,32,256], index: 1, kind: input, shape index: {}]   ;;  %s2126_s2 = inlined_call_operand.hbm [shape: f32[2,32,256], index: 2, kind: input, shape index: {}]   ;;  %s2127_s3 = inlined_call_operand.vmem [shape: f32[48,32], index: 3, kind: input, shape index: {}]   ;;  %s2128_s4 = inlined_call_operand.vmem [shape: f32[48,1], index: 4, kind: input, shape index: {}]   ;;  %s2129_s5 = inlined_call_operand.hbm [shape: f32[2,32,256], index: 5, kind: output, shape index: {}]  }
   0x1   :  { %10 = sst [smem:[#allocation4]] %s2124_s0 }
   0x2   :  { %11 = vsyncpa [#allocation6], 0 }
   0x3   :  { %13 = vsyncpa [#allocation6 + $0x1], 0 }
   0x4   :  { %14 = vsyncpa [#allocation7], 0 }
   0x5   :  { %16 = vsyncpa [#allocation7 + $0x1], 0  ;;  %s1592_s20 = smov 0   ;;  %s1594_s21 = smov 0  }
   0x6   :  { %s1596_s22 = smov 0   ;;  %s1598_s23 = smov 0  }
   0x7   :  { %s1600_s24 = smov 0   ;;  %s1602_s25 = smov 0  }
   0x8   :  { %s1604_s26 = smov 0   ;;  %s1606_s27 = smov 0  }
   0x9 LB: > { %2133 = sst [smem:[#allocation11_spill]] %s1530_s22  ;;  %s1191_s0 = sadd.s32 4294967295, %s1550_s27   ;;  %s1550_s27 = sphi %s1606_s27, %s22_s27   ;;  %s1546_s26 = sphi %s1604_s26, %s2150_s26   ;;  %s1542_s25 = sphi %s1602_s25, %s2149_s25   ;;  %s1538_s24 = sphi %s1600_s24, %s2148_s24   ;;  %s1534_s23 = sphi %s1598_s23, %s2147_s23   ;;  %s1530_s22 = sphi %s1596_s22, %s2142_s22   ;;  %s1526_s21 = sphi %s1594_s21, %s2146_s21   ;;  %s1522_s20 = sphi %s1592_s20, %s2145_s20  }
   0xa   : > { %s1192_s28 = sadd.s32 4294967294, %s1550_s27   ;;  %s31_s29 = sadd.s32 1, %s1542_s25 }
   0xb   : > { %s34_s30 = sadd.s32 1, %s1546_s26  ;;  %p32_p0 = scmp.ge.s32.totalorder %s31_s29, 2 }
   0xc   : > { %s90_s6 = sadd.s32 1, %s1530_s22  ;;  %p97_p1 = scmp.ne.s32.totalorder %s1530_s22, %s1526_s21 }
   0xd   : > { %p98_p2 = scmp.eq.s32.totalorder %s1550_s27, 0  ;;  %s2152_s29 = smov (%p32_p0, %s31_s29), 0 }
   0xe   : > { %2134 = sst [smem:[#allocation12_spill]] %s2152_s29  ;;  %s2154_s30 = smov (!%p32_p0, %s34_s30), %s1546_s26 }
   0xf   : > { %s86_s7 = ssub.s32 %s1542_s25, %s2152_s29  ;;  %p1645_p3 = por %p98_p2, %p97_p1 }
  0x10   : > { %p36_p4 = scmp.ge.s32.totalorder %s2154_s30, 2  ;;  %p103_p5 = scmp.ne.s32.totalorder %s1526_s21, %s1522_s20 }
  0x11   : > { %p104_p6 = scmp.eq.s32.totalorder %s1191_s0, 0  ;;  %p171_p7 = scmp.eq.s32.totalorder %s1191_s0, 3 }
  0x12   : > { %s2156_s30 = smov (%p36_p4, %s2154_s30), 0  ;;  %p177_p10 = scmp.eq.s32.totalorder %s1192_s28, 3 }
  0x13   : > { %2136 = sst [smem:[#allocation13_spill]] %s2156_s30  ;;  %p1653_p8 = por %p104_p6, %p103_p5 }
  0x14   : > { %p1657_p9 = por %p171_p7, %p97_p1  ;;  %s85_s11 = ssub.s32 %s1546_s26, %s2156_s30 }
  0x15   : > { %s87_s12 = sor.u32 %s86_s7, %s85_s11  ;;  %p1663_p12 = por %p177_p10, %p103_p5 }
  0x16   : > { %p88_p11 = scmp.eq.s32.totalorder %s87_s12, 0  ;;  %p1279_p13 = scmp.lt.s32.totalorder %s1550_s27, 4 }
  0x17   : > { %s214_s14 = sand.u32 1, %s1530_s22   ;;  %s1196_s17 = sshll.u32 %s1546_s26, 3 }
  0x18   : > { %s1670_s15 = scalar_select %p88_p11, %s1530_s22, %s90_s6  }
  0x19   : > { %s1195_s16 = sshll.u32 %s214_s14, 5  ;;  %s222_s18 = sadd.s32 %s1542_s25, %s1196_s17 }
  0x1a   : > { %2140 = sst [smem:[#allocation14_spill]] %s1670_s15  ;;  %s218_s19 = scalar_lea.vmem [#allocation5], %s1195_s16 }
  0x1b   : > { %s227_s0 = sshll.u32 %s218_s19, 4  ;;  %s1197_s30 = sshll.u32 %s222_s18, 3  ;;  %s228_s0 = int_to_ptr.vmem [resolvable:$true] %s227_s0 }
  0x1c   : > { %s224_s11 = scalar_lea.hbm %s2126_s2, %s1197_s30  ;;  %p1272_p0 = pnand %p1279_p13, %p1645_p3 }
  0x1d   : > { %s225_s12 = sshll.u32 %s224_s11, 4  ;;  %s215_s29 = scalar_lea.sflag [#allocation6], %s214_s14  ;;  %s226_s12 = int_to_ptr.hbm [resolvable:$true] %s225_s12 }
  0x1e   : > { %s1552_s6 = smov 256   ;;  %s1553_s15 = smov 128  }
  0x1f   : > { %s1554_s22 = smov 8   ;;  %p1198_p1 = scmp.ge.s32.totalorder %s1550_s27, 1 }
  0x20   : > { %1274 = dma.hbm_to_vmem [thread:$0]  (!%p1272_p0), %s226_s12, 512, %s228_s0, %s215_s29, %s1552_s6, %s1553_s15, %s1554_s22  }
  0x21   : > { %p235_p2 = scmp.lt.s32.totalorder %s1550_s27, 5 }
  0x23   : > { %p236_p4 = pnand %p1198_p1, %p235_p2 }
  0x24   : > { %s1682_s16 = sand.u32 (!%p236_p4), 1, %s1526_s21  }
  0x25   : > { %239 = sbr.rel (%p236_p4) target bundleno = 1022 (0x3fe), region = 40  ;;  %s1199_s30 = sshll.u32 (!%p236_p4), %s1682_s16, 5 }
  0x26   : > { %s242_s8 = scalar_lea.sflag (!%p236_p4), [#allocation6], %s1682_s16  ;;  %s1686_s17 = scalar_lea.vmem (!%p236_p4), [#allocation5], %s1199_s30 }
  0x2a   : > { %1513 = dma.done.wait (%p1653_p8), %s242_s8, 512  }
  0x2b   : > { %1515 = vsyncadd (%p1653_p8), %s242_s8, 4294966784  ;;  %p278_p3 = scmp.lt.s32.totalorder %s1538_s24, 1  ;;  %s1697_s19 = scalar_lea.vmem [#allocation8], %s1199_s30 }
  0x2c   : > { %p1203_p5 = scmp.ne.s32.totalorder %s1534_s23, 0 }
  0x2d   : > { %s279_s22 = scalar_select %p278_p3, %s1538_s24, 1 }
  0x2e   : > { %286 = sbr.rel (%p1203_p5) target bundleno = 481 (0x1e1), region = 48 }
  0x2f   : > { %s1255_s29 = sshll.u32 %s279_s22, 6 }
  0x30   : > { %s282_s18 = scalar_lea.vmem %s2125_s1, %s1255_s29 }
  0x33   : > { %v293_v0 = vld [vmem:[%s282_s18 + $0x30] sm:$0xff]  ;;  %v294_v1 = vld [vmem:[%s282_s18 + $0x38] sm:$0xff]  ;;  %v291_v2 = vld [vmem:[%s282_s18 + $0x20] sm:$0xff]  ;;  %v1555_v6 = vmov 0   ;;  %vm337_vm0 = vcmask 261120   ;;  %vm504_vm1 = vcmask 64512  }
  0x34   : > { %368 = vmatpush.msra.mxu0 %v293_v0  ;;  %403 = vmatpush.msra.mxu1 %v294_v1  ;;  %v292_v3 = vld [vmem:[%s282_s18 + $0x28] sm:$0xff]  ;;  %v289_v4 = vld [vmem:[%s282_s18 + $0x10] sm:$0xff]  ;;  %v290_v5 = vld [vmem:[%s282_s18 + $0x18] sm:$0xff] }
  0x35   : > { %1353 = vset.pattern.permute.xlu0 %v1555_v6  ;;  %1256 = vmatpush.msra.mxu2 %v293_v0  ;;  %v302_v7 = vld [vmem:[%s2128_s4 + $0x8] sm:$0xff]  ;;  %v287_v8 = vld [vmem:[%s282_s18] sm:$0xff]  ;;  %v298_v12 = vld [vmem:[%s2127_s3 + $0x18] sm:$0xff] }
  0x36   : > { %369 = vmatpush.msra.mxu0 %v291_v2  ;;  %404 = vmatpush.msra.mxu1 %v292_v3  ;;  %v288_v9 = vld [vmem:[%s282_s18 + $0x8] sm:$0xff]  ;;  %v295_v10 = vld [vmem:[%s2127_s3] sm:$0xff]  ;;  %v303_v18 = vld [vmem:[%s2128_s4 + $0x10] sm:$0xff] }
  0x37   : > { %314 = vperm.xlu0 %1353, %v302_v7   ;;  %1260 = vmatpush.msra.mxu3 %v294_v1  ;;  %v301_v11 = vld [vmem:[%s2128_s4] sm:$0xff]  ;;  %v296_v14 = vld [vmem:[%s2127_s3 + $0x8] sm:$0xff]  ;;  %v297_v19 = vld [vmem:[%s2127_s3 + $0x10] sm:$0xff] }
  0x38   : > { %370 = vmatpush.msra.mxu0 %v289_v4  ;;  %405 = vmatpush.msra.mxu1 %v290_v5  ;;  %v305_v13 = vld [vmem:[%s2128_s4 + $0x20] sm:$0xff]  ;;  %v300_v17 = vld [vmem:[%s2127_s3 + $0x28] sm:$0xff]  ;;  %v304_v20 = vld [vmem:[%s2128_s4 + $0x18] sm:$0xff] }
  0x39   : > { %1257 = vmatpush.msra.mxu2 %v291_v2  ;;  %1261 = vmatpush.msra.mxu3 %v292_v3  ;;  %v299_v15 = vld [vmem:[%s2127_s3 + $0x20] sm:$0xff]  ;;  %v306_v26 = vld [vmem:[%s2128_s4 + $0x28] sm:$0xff] }
  0x3a   : > { %371 = vmatpush.msra.mxu0 %v287_v8  ;;  %406 = vmatpush.msra.mxu1 %v288_v9 }
  0x3b   : > { %1204 = vmatmul.msk.f32.vlgmr.msra.gmra.mxu0 %vm337_vm0, %v295_v10  ;;  %1210 = vmatmul.msk.f32.vlgmr.msra.gmra.mxu1 %vm337_vm0, %v295_v10 }
  0x3c   : > { %1258 = vmatpush.msra.mxu2 %v289_v4  ;;  %1262 = vmatpush.msra.mxu3 %v290_v5 }
  0x3d   : > { %1355 = vset.pattern.permute.xlu2 %v1555_v6  ;;  %1354 = vset.pattern.permute.xlu1 %v1555_v6 }
  0x3e   : > { %1259 = vmatpush.msra.mxu2 %v287_v8  ;;  %1263 = vmatpush.msra.mxu3 %v288_v9 }
  0x3f   : > { %309 = vperm.xlu0 %1353, %v301_v11   ;;  %1207 = vmatmul.msk.f32.vlgmr.msra.gmra.mxu2 %vm337_vm0, %v298_v12 }
  0x40   : > { %1213 = vmatmul.msk.f32.vlgmr.msra.gmra.mxu3 %vm337_vm0, %v298_v12  ;;  %329 = vperm.xlu2 %1355, %v305_v13  }
  0x41   : > { %319 = vperm.xlu1 %1354, %v303_v18  }
  0x43   : > { %1205 = vmatmul.msk.f32.gmra.mxu0 %vm337_vm0, %v296_v14  ;;  %1211 = vmatmul.msk.f32.gmra.mxu1 %vm337_vm0, %v296_v14 }
  0x47   : > { %1208 = vmatmul.msk.f32.gmra.mxu2 %vm337_vm0, %v299_v15 }
  0x48   : > { %1214 = vmatmul.msk.f32.gmra.mxu3 %vm337_vm0, %v299_v15 }
  0x49   : > { %324 = vperm.xlu1 %1354, %v304_v20  }
  0x4b   : > { %1206 = vmatmul.msk.f32.gmra.mxu0 %vm337_vm0, %v297_v19  ;;  %1212 = vmatmul.msk.f32.gmra.mxu1 %vm337_vm0, %v297_v19 }
  0x4f   : > { %1209 = vmatmul.msk.f32.gmra.mxu2 %vm337_vm0, %v300_v17 }
  0x50   : > { %1215 = vmatmul.msk.f32.gmra.mxu3 %vm337_vm0, %v300_v17 }
  0x51   : > { %334 = vperm.xlu1 %1354, %v306_v26  }
  0x9a   : > { %v330_v33 = vpop.permute.xlu2 %329 }
  0xa9   : > { %v315_v16 = vpop.permute.xlu0 %314 }
  0xb1   : > { %v310_v21 = vpop.permute.xlu0 %309 }
  0xb3   : > { %v320_v53 = vpop.permute.xlu1 %319 }
  0xb8   : > { %v373_v22 = vpop.f32.mrf.mxu0  ;;  %v408_v23 = vpop.f32.mrf.mxu1 }
  0xb9   : > { %v374_v24 = vadd.f32 %v373_v22, %v310_v21  ;;  %v409_v25 = vadd.f32 %v408_v23, %v310_v21 }
  0xbb   : > { %426 = vst [vmem:[#allocation2] sm:$0xff] %v374_v24  ;;  %v325_v56 = vpop.permute.xlu1 %324 }
  0xbc   : > { %427 = vst [vmem:[#allocation2 + $0x8] sm:$0xff] %v409_v25 }
  0xc0   : > { %v376_v27 = vpop.f32.mrf.mxu0  ;;  %v411_v28 = vpop.f32.mrf.mxu1 }
  0xc1   : > { %v377_v29 = vadd.f32 %v376_v27, %v315_v16  ;;  %v412_v30 = vadd.f32 %v411_v28, %v315_v16 }
  0xc2   : > { %v382_v31 = vpop.f32.mrf.mxu2 }
  0xc3   : > { %428 = vst [vmem:[#allocation2 + $0x10] sm:$0xff] %v377_v29  ;;  %472 = vxpose.xlu0.b32.start.end [1/1] (short) %v412_v30, 128  ;;  %440 = vxpose.xlu2.b32.start.end [1/1] (short) %v377_v29, 128  ;;  %v417_v32 = vpop.f32.mrf.mxu3  ;;  %v383_v57 = vadd.f32 %v382_v31, %v325_v56  ;;  %v335_v61 = vpop.permute.xlu1 %334 }
  0xc4   : > { %429 = vst [vmem:[#allocation2 + $0x18] sm:$0xff] %v412_v30  ;;  %v418_v58 = vadd.f32 %v417_v32, %v325_v56 }
  0xc5   : > { %432 = vst [vmem:[#allocation2 + $0x30] sm:$0xff] %v383_v57 }
  0xc6   : > { %433 = vst [vmem:[#allocation2 + $0x38] sm:$0xff] %v418_v58 }
  0xc8   : > { %v379_v62 = vpop.f32.mrf.mxu0  ;;  %v414_v1 = vpop.f32.mrf.mxu1 }
  0xc9   : > { %v380_v63 = vadd.f32 %v379_v62, %v320_v53  ;;  %v415_v3 = vadd.f32 %v414_v1, %v320_v53 }
  0xca   : > { %v385_v34 = vpop.f32.mrf.mxu2 }
  0xcb   : > { %v386_v35 = vadd.f32 %v385_v34, %v330_v33  ;;  %v420_v36 = vpop.f32.mrf.mxu3  ;;  %430 = vst [vmem:[#allocation2 + $0x20] sm:$0xff] %v380_v63 }
  0xcc   : > { %v421_v37 = vadd.f32 %v420_v36, %v330_v33  ;;  %431 = vst [vmem:[#allocation2 + $0x28] sm:$0xff] %v415_v3 }
  0xcd   : > { %434 = vst [vmem:[#allocation2 + $0x40] sm:$0xff] %v386_v35 }
  0xce   : > { %435 = vst [vmem:[#allocation2 + $0x48] sm:$0xff] %v421_v37 }
  0xd2   : > { %v388_v0 = vpop.f32.mrf.mxu2 }
  0xd3   : > { %v389_v2 = vadd.f32 %v388_v0, %v335_v61  ;;  %v423_v4 = vpop.f32.mrf.mxu3 }
  0xd4   : > { %v424_v5 = vadd.f32 %v423_v4, %v335_v61 }
  0xd5   : > { %436 = vst [vmem:[#allocation2 + $0x50] sm:$0xff] %v389_v2 }
  0xd6   : > { %437 = vst [vmem:[#allocation2 + $0x58] sm:$0xff] %v424_v5 }
 0x15c   : > { %v456_v38 = vpop.trf.xlu2 }
 0x15d   : > { %505 = vst.msk [vmem:[#allocation3] sm:$0xff] %vm504_vm1, %v456_v38 }
 0x164   : > { %v457_v39 = vpop.trf.xlu2 }
 0x165   : > { %506 = vst.msk [vmem:[#allocation3 + $0x8] sm:$0xff] %vm504_vm1, %v457_v39 }
 0x167   : > { %v488_v40 = vpop.trf.xlu0 }
 0x168   : > { %521 = vst.msk [vmem:[#allocation3 + $0x80] sm:$0xff] %vm504_vm1, %v488_v40 }
 0x16c   : > { %v458_v41 = vpop.trf.xlu2 }
 0x16d   : > { %507 = vst.msk [vmem:[#allocation3 + $0x10] sm:$0xff] %vm504_vm1, %v458_v41 }
 0x16f   : > { %v489_v42 = vpop.trf.xlu0 }
 0x170   : > { %522 = vst.msk [vmem:[#allocation3 + $0x88] sm:$0xff] %vm504_vm1, %v489_v42 }
 0x174   : > { %v459_v43 = vpop.trf.xlu2 }
 0x175   : > { %508 = vst.msk [vmem:[#allocation3 + $0x18] sm:$0xff] %vm504_vm1, %v459_v43 }
 0x177   : > { %v490_v44 = vpop.trf.xlu0 }
 0x178   : > { %523 = vst.msk [vmem:[#allocation3 + $0x90] sm:$0xff] %vm504_vm1, %v490_v44 }
 0x17c   : > { %v460_v45 = vpop.trf.xlu2 }
 0x17d   : > { %509 = vst.msk [vmem:[#allocation3 + $0x20] sm:$0xff] %vm504_vm1, %v460_v45 }
 0x17f   : > { %v491_v46 = vpop.trf.xlu0 }
 0x180   : > { %524 = vst.msk [vmem:[#allocation3 + $0x98] sm:$0xff] %vm504_vm1, %v491_v46 }
 0x184   : > { %v461_v47 = vpop.trf.xlu2 }
 0x185   : > { %510 = vst.msk [vmem:[#allocation3 + $0x28] sm:$0xff] %vm504_vm1, %v461_v47 }
 0x187   : > { %v492_v48 = vpop.trf.xlu0 }
 0x188   : > { %525 = vst.msk [vmem:[#allocation3 + $0xa0] sm:$0xff] %vm504_vm1, %v492_v48 }
 0x18c   : > { %v462_v49 = vpop.trf.xlu2 }
 0x18d   : > { %511 = vst.msk [vmem:[#allocation3 + $0x30] sm:$0xff] %vm504_vm1, %v462_v49 }
 0x18f   : > { %v493_v50 = vpop.trf.xlu0 }
 0x190   : > { %526 = vst.msk [vmem:[#allocation3 + $0xa8] sm:$0xff] %vm504_vm1, %v493_v50 }
 0x194   : > { %v463_v51 = vpop.trf.xlu2 }
 0x195   : > { %512 = vst.msk [vmem:[#allocation3 + $0x38] sm:$0xff] %vm504_vm1, %v463_v51 }
 0x197   : > { %v494_v52 = vpop.trf.xlu0 }
 0x198   : > { %527 = vst.msk [vmem:[#allocation3 + $0xb0] sm:$0xff] %vm504_vm1, %v494_v52 }
 0x19c   : > { %v464_v54 = vpop.trf.xlu2 }
 0x19d   : > { %513 = vst.msk [vmem:[#allocation3 + $0x40] sm:$0xff] %vm504_vm1, %v464_v54 }
 0x19f   : > { %v495_v55 = vpop.trf.xlu0 }
 0x1a0   : > { %528 = vst.msk [vmem:[#allocation3 + $0xb8] sm:$0xff] %vm504_vm1, %v495_v55 }
 0x1a4   : > { %v465_v59 = vpop.trf.xlu2 }
 0x1a5   : > { %514 = vst.msk [vmem:[#allocation3 + $0x48] sm:$0xff] %vm504_vm1, %v465_v59 }
 0x1a7   : > { %v496_v60 = vpop.trf.xlu0 }
 0x1a8   : > { %529 = vst.msk [vmem:[#allocation3 + $0xc0] sm:$0xff] %vm504_vm1, %v496_v60 }
 0x1ac   : > { %v466_v6 = vpop.trf.xlu2 }
 0x1ad   : > { %515 = vst.msk [vmem:[#allocation3 + $0x50] sm:$0xff] %vm504_vm1, %v466_v6 }
 0x1af   : > { %v497_v7 = vpop.trf.xlu0 }
 0x1b0   : > { %530 = vst.msk [vmem:[#allocation3 + $0xc8] sm:$0xff] %vm504_vm1, %v497_v7 }
 0x1b4   : > { %v467_v8 = vpop.trf.xlu2 }
 0x1b5   : > { %516 = vst.msk [vmem:[#allocation3 + $0x58] sm:$0xff] %vm504_vm1, %v467_v8 }
 0x1b7   : > { %v498_v9 = vpop.trf.xlu0 }
 0x1b8   : > { %531 = vst.msk [vmem:[#allocation3 + $0xd0] sm:$0xff] %vm504_vm1, %v498_v9 }
 0x1bc   : > { %v468_v10 = vpop.trf.xlu2 }
 0x1bd   : > { %517 = vst.msk [vmem:[#allocation3 + $0x60] sm:$0xff] %vm504_vm1, %v468_v10 }
 0x1bf   : > { %v499_v11 = vpop.trf.xlu0 }
 0x1c0   : > { %532 = vst.msk [vmem:[#allocation3 + $0xd8] sm:$0xff] %vm504_vm1, %v499_v11 }
 0x1c4   : > { %v469_v12 = vpop.trf.xlu2 }
 0x1c5   : > { %518 = vst.msk [vmem:[#allocation3 + $0x68] sm:$0xff] %vm504_vm1, %v469_v12 }
 0x1c7   : > { %v500_v13 = vpop.trf.xlu0 }
 0x1c8   : > { %533 = vst.msk [vmem:[#allocation3 + $0xe0] sm:$0xff] %vm504_vm1, %v500_v13 }
 0x1cc   : > { %v470_v14 = vpop.trf.xlu2 }
 0x1cd   : > { %519 = vst.msk [vmem:[#allocation3 + $0x70] sm:$0xff] %vm504_vm1, %v470_v14 }
 0x1cf   : > { %v501_v15 = vpop.trf.xlu0 }
 0x1d0   : > { %534 = vst.msk [vmem:[#allocation3 + $0xe8] sm:$0xff] %vm504_vm1, %v501_v15 }
 0x1d4   : > { %v471_v16 = vpop.trf.xlu2 }
 0x1d5   : > { %520 = vst.msk [vmem:[#allocation3 + $0x78] sm:$0xff] %vm504_vm1, %v471_v16 }
 0x1d7   : > { %v502_v17 = vpop.trf.xlu0 }
 0x1d8   : > { %535 = vst.msk [vmem:[#allocation3 + $0xf0] sm:$0xff] %vm504_vm1, %v502_v17 }
 0x1df   : > { %v503_v18 = vpop.trf.xlu0 }
 0x1e0   : > { %536 = vst.msk [vmem:[#allocation3 + $0xf8] sm:$0xff] %vm504_vm1, %v503_v18 }
 0x1e1 PF: > { %s1216_s29 = sshll.u32 %s1534_s23, 7  ;;  %v543_v19 = vld [vmem:[#allocation3] sm:$0xff]  ;;  %vm575_vm2 = vcmask 64512   ;;  %v564_v20 = vld [vmem:[#allocation3 + $0xa8] sm:$0xff]  ;;  %v565_v24 = vld [vmem:[#allocation3 + $0xb0] sm:$0xff]  ;;  %s1054_s9 = sld [smem:[#allocation4]] }
 0x1e2   : > { %s538_s14 = sshra.s32 %s1216_s29, 7  ;;  %v559_v22 = vld [vmem:[#allocation3 + $0x80] sm:$0xff]  ;;  %v544_v23 = vld [vmem:[#allocation3 + $0x8] sm:$0xff]  ;;  %v545_v26 = vld [vmem:[#allocation3 + $0x10] sm:$0xff]  ;;  %s1251_s0 = sshll.u32 %s1538_s24, 3 }
 0x1e3   : > { %s1217_s15 = sshll.u32 %s538_s14, 3  ;;  %v560_v25 = vld [vmem:[#allocation3 + $0x88] sm:$0xff]  ;;  %v566_v27 = vld [vmem:[#allocation3 + $0xb8] sm:$0xff]  ;;  %v561_v28 = vld [vmem:[#allocation3 + $0x90] sm:$0xff]  ;;  %s1083_s28 = sadd.s32 %s1534_s23, %s1251_s0 }
 0x1e4   : > { %s541_s18 = scalar_lea.vmem [#allocation2], %s1217_s15  ;;  %v546_v29 = vld [vmem:[#allocation3 + $0x18] sm:$0xff]  ;;  %v567_v30 = vld [vmem:[#allocation3 + $0xc0] sm:$0xff]  ;;  %v568_v33 = vld [vmem:[#allocation3 + $0xc8] sm:$0xff]  ;;  %s1252_s7 = sshll.u32 %s1083_s28, 3 }
 0x1e5   : > { %v542_v21 = vld [vmem:[%s541_s18] sm:$0xff]  ;;  %v562_v31 = vld [vmem:[#allocation3 + $0x98] sm:$0xff]  ;;  %v548_v36 = vld [vmem:[#allocation3 + $0x28] sm:$0xff]  ;;  %s1085_s6 = scalar_lea.hbm %s2129_s5, %s1252_s7  ;;  %s1086_s30 = sshll.u32 %s1697_s19, 4  ;;  %s1087_s30 = int_to_ptr.vmem [resolvable:$true] %s1086_s30 }
 0x1e6   : > { %687 = vmatpush.msra.mxu0 %v542_v21  ;;  %1266 = vmatpush.msra.mxu3 %v542_v21  ;;  %v547_v32 = vld [vmem:[#allocation3 + $0x20] sm:$0xff]  ;;  %v569_v37 = vld [vmem:[#allocation3 + $0xd0] sm:$0xff]  ;;  %v556_v38 = vld [vmem:[#allocation3 + $0x68] sm:$0xff]  ;;  %s1088_s24 = sshll.u32 %s1085_s6, 4  ;;  %s1073_s23 = scalar_lea.sflag [#allocation7], %s1682_s16  ;;  %s1089_s24 = int_to_ptr.hbm [resolvable:$true] %s1088_s24 }
 0x1e7   : > { %1218 = vmatmul.msk.f32.vlgmr.msra.gmra.mxu0 %vm575_vm2, %v543_v19  ;;  %1239 = vmatmul.msk.f32.vlgmr.msra.gmra.mxu3 %vm575_vm2, %v564_v20  ;;  %v563_v34 = vld [vmem:[#allocation3 + $0xa0] sm:$0xff]  ;;  %v549_v39 = vld [vmem:[#allocation3 + $0x30] sm:$0xff]  ;;  %v570_v40 = vld [vmem:[#allocation3 + $0xd8] sm:$0xff]  ;;  %s1466_s8 = sshra.s32 %s1089_s24, 4  ;;  %s1472_s15 = scalar_lea.hbm %s2129_s5, 128  ;;  %s1467_s8 = int_to_ptr.hbm [resolvable:$true] %s1466_s8 }
 0x1e8   : > { %1265 = vmatpush.msra.mxu2 %v542_v21  ;;  %1264 = vmatpush.msra.mxu1 %v542_v21  ;;  %v555_v35 = vld [vmem:[#allocation3 + $0x60] sm:$0xff]  ;;  %v557_v41 = vld [vmem:[#allocation3 + $0x70] sm:$0xff]  ;;  %v550_v42 = vld [vmem:[#allocation3 + $0x38] sm:$0xff]  ;;  %s1468_s22 = scalar_lea.hbm %s1467_s8, 32  ;;  %p1473_p10 = scmp.lt.s32.totalorder %s1467_s8, %s2129_s5 }
 0x1e9   : > { %1234 = vmatmul.msk.f32.vlgmr.msra.gmra.mxu2 %vm575_vm2, %v559_v22  ;;  %1230 = vmatmul.msk.f32.vlgmr.msra.gmra.mxu1 %vm575_vm2, %v555_v35  ;;  %v571_v43 = vld [vmem:[#allocation3 + $0xe0] sm:$0xff]  ;;  %v558_v44 = vld [vmem:[#allocation3 + $0x78] sm:$0xff]  ;;  %v572_v46 = vld [vmem:[#allocation3 + $0xe8] sm:$0xff]  ;;  %p1469_p6 = scmp.ne.s32.totalorder %s1467_s8, %s1468_s22  ;;  %p1474_p11 = scmp.lt.s32.totalorder %s1472_s15, %s1468_s22 }
 0x1ea   : > { %v551_v45 = vld [vmem:[#allocation3 + $0x40] sm:$0xff]  ;;  %v552_v47 = vld [vmem:[#allocation3 + $0x48] sm:$0xff]  ;;  %v573_v48 = vld [vmem:[#allocation3 + $0xf0] sm:$0xff] }
 0x1eb   : > { %v553_v49 = vld [vmem:[#allocation3 + $0x50] sm:$0xff]  ;;  %v574_v50 = vld [vmem:[#allocation3 + $0xf8] sm:$0xff]  ;;  %p1470_p7 = pnand %p1469_p6, %p1657_p9  ;;  %p1475_p13 = por %p1474_p11, %p1473_p10 }
 0x1ec   : > { %v554_v51 = vld [vmem:[#allocation3 + $0x58] sm:$0xff] }
 0x1ed   : > { %p1471_p8 = pneg %p1470_p7 }
 0x1ef   : > { %1219 = vmatmul.msk.f32.gmra.mxu0 %vm575_vm2, %v544_v23  ;;  %1240 = vmatmul.msk.f32.gmra.mxu3 %vm575_vm2, %v565_v24  ;;  %p1476_p0 = pnand %p1475_p13, %p1471_p8 }
 0x1f1   : > { %1235 = vmatmul.msk.f32.gmra.mxu2 %vm575_vm2, %v560_v25  ;;  %1231 = vmatmul.msk.f32.gmra.mxu1 %vm575_vm2, %v556_v38 }
 0x1f7   : > { %1220 = vmatmul.msk.f32.gmra.mxu0 %vm575_vm2, %v545_v26  ;;  %1241 = vmatmul.msk.f32.gmra.mxu3 %vm575_vm2, %v566_v27 }
 0x1f9   : > { %1236 = vmatmul.msk.f32.gmra.mxu2 %vm575_vm2, %v561_v28  ;;  %1232 = vmatmul.msk.f32.gmra.mxu1 %vm575_vm2, %v557_v41 }
 0x1ff   : > { %1221 = vmatmul.msk.f32.gmra.mxu0 %vm575_vm2, %v546_v29  ;;  %1242 = vmatmul.msk.f32.gmra.mxu3 %vm575_vm2, %v567_v30 }
 0x201   : > { %1237 = vmatmul.msk.f32.gmra.mxu2 %vm575_vm2, %v562_v31  ;;  %1233 = vmatmul.msk.f32.gmra.mxu1 %vm575_vm2, %v558_v44 }
 0x207   : > { %1222 = vmatmul.msk.f32.gmra.mxu0 %vm575_vm2, %v547_v32  ;;  %1243 = vmatmul.msk.f32.gmra.mxu3 %vm575_vm2, %v568_v33 }
 0x209   : > { %1238 = vmatmul.msk.f32.gmra.mxu2 %vm575_vm2, %v563_v34 }
 0x20f   : > { %1223 = vmatmul.msk.f32.gmra.mxu0 %vm575_vm2, %v548_v36  ;;  %1244 = vmatmul.msk.f32.gmra.mxu3 %vm575_vm2, %v569_v37 }
 0x217   : > { %1224 = vmatmul.msk.f32.gmra.mxu0 %vm575_vm2, %v549_v39  ;;  %1245 = vmatmul.msk.f32.gmra.mxu3 %vm575_vm2, %v570_v40 }
 0x21f   : > { %1225 = vmatmul.msk.f32.gmra.mxu0 %vm575_vm2, %v550_v42  ;;  %1246 = vmatmul.msk.f32.gmra.mxu3 %vm575_vm2, %v571_v43 }
 0x227   : > { %1226 = vmatmul.msk.f32.gmra.mxu0 %vm575_vm2, %v551_v45  ;;  %1247 = vmatmul.msk.f32.gmra.mxu3 %vm575_vm2, %v572_v46 }
 0x22f   : > { %1227 = vmatmul.msk.f32.gmra.mxu0 %vm575_vm2, %v552_v47  ;;  %1248 = vmatmul.msk.f32.gmra.mxu3 %vm575_vm2, %v573_v48 }
 0x237   : > { %1228 = vmatmul.msk.f32.gmra.mxu0 %vm575_vm2, %v553_v49  ;;  %1249 = vmatmul.msk.f32.gmra.mxu3 %vm575_vm2, %v574_v50 }
 0x23f   : > { %1229 = vmatmul.msk.f32.gmra.mxu0 %vm575_vm2, %v554_v51 }
 0x264   : > { %v1813_v52 = vpop.f32.mrf.mxu0 }
 0x266   : > { %v1847_v5 = vpop.f32.mrf.mxu1 }
 0x26a   : > { %v1815_v53 = vpop.f32.mrf.mxu3 }
 0x26c   : > { %v1817_v54 = vpop.f32.mrf.mxu0  ;;  %v1837_v0 = vpop.f32.mrf.mxu2 }
 0x26e   : > { %v1855_v9 = vpop.f32.mrf.mxu1 }
 0x272   : > { %v1819_v55 = vpop.f32.mrf.mxu3 }
 0x274   : > { %v1821_v56 = vpop.f32.mrf.mxu0  ;;  %v1845_v4 = vpop.f32.mrf.mxu2 }
 0x276   : > { %v1868_v16 = vpop.f32.mrf.mxu1 }
 0x27a   : > { %v1823_v57 = vpop.f32.mrf.mxu3 }
 0x27c   : > { %v1825_v58 = vpop.f32.mrf.mxu0  ;;  %v1853_v8 = vpop.f32.mrf.mxu2 }
 0x27e   : > { %v1890_v31 = vpop.f32.mrf.mxu1 }
 0x282   : > { %v1827_v59 = vpop.f32.mrf.mxu3 }
 0x284   : > { %v1829_v60 = vpop.f32.mrf.mxu0  ;;  %v1865_v14 = vpop.f32.mrf.mxu2 }
 0x285   : > { %v785_v13 = vmax.f32 %v1813_v52, %v1829_v60 }
 0x28a   : > { %v1831_v61 = vpop.f32.mrf.mxu3 }
 0x28c   : > { %v1833_v62 = vpop.f32.mrf.mxu0  ;;  %v1884_v27 = vpop.f32.mrf.mxu2 }
 0x28d   : > { %v786_v11 = vmax.f32 %v1817_v54, %v1833_v62 }
 0x292   : > { %v1835_v63 = vpop.f32.mrf.mxu3 }
 0x294   : > { %v1839_v1 = vpop.f32.mrf.mxu0 }
 0x295   : > { %v787_v17 = vmax.f32 %v1821_v56, %v1839_v1 }
 0x29a   : > { %v1843_v3 = vpop.f32.mrf.mxu3 }
 0x29c   : > { %v1841_v2 = vpop.f32.mrf.mxu0 }
 0x29d   : > { %v788_v26 = vmax.f32 %v1825_v58, %v1841_v2 }
 0x2a2   : > { %v1851_v7 = vpop.f32.mrf.mxu3 }
 0x2a4   : > { %v1849_v6 = vpop.f32.mrf.mxu0 }
 0x2a5   : > { %v789_v18 = vmax.f32 %v785_v13, %v1849_v6 }
 0x2a7   : > { %v793_v22 = vmax.f32 %v789_v18, %v1847_v5 }
 0x2a9   : > { %v797_v28 = vmax.f32 %v793_v22, %v1837_v0 }
 0x2aa   : > { %v1861_v12 = vpop.f32.mrf.mxu3 }
 0x2ab   : > { %v801_v34 = vmax.f32 %v797_v28, %v1884_v27 }
 0x2ac   : > { %v1857_v10 = vpop.f32.mrf.mxu0 }
 0x2ad   : > { %v790_v15 = vmax.f32 %v786_v11, %v1857_v10  ;;  %v805_v39 = vmax.f32 %v801_v34, %v1827_v59 }
 0x2af   : > { %v794_v20 = vmax.f32 %v790_v15, %v1855_v9  ;;  %v809_v45 = vmax.f32 %v805_v39, %v1851_v7 }
 0x2b1   : > { %v798_v24 = vmax.f32 %v794_v20, %v1845_v4 }
 0x2b2   : > { %v1880_v25 = vpop.f32.mrf.mxu3 }
 0x2b3   : > { %v802_v32 = vmax.f32 %v798_v24, %v1815_v53 }
 0x2b4   : > { %v1873_v19 = vpop.f32.mrf.mxu0 }
 0x2b5   : > { %v791_v21 = vmax.f32 %v787_v17, %v1873_v19  ;;  %v806_v37 = vmax.f32 %v802_v32, %v1831_v61 }
 0x2b7   : > { %v795_v23 = vmax.f32 %v791_v21, %v1868_v16  ;;  %v810_v43 = vmax.f32 %v806_v37, %v1861_v12 }
 0x2b9   : > { %v799_v29 = vmax.f32 %v795_v23, %v1853_v8  ;;  %v813_v48 = vmax.f32 %v809_v45, %v810_v43 }
 0x2ba   : > { %v1902_v42 = vpop.f32.mrf.mxu3 }
 0x2bb   : > { %v803_v36 = vmax.f32 %v799_v29, %v1819_v55 }
 0x2bc   : > { %v1888_v30 = vpop.f32.mrf.mxu0 }
 0x2bd   : > { %v792_v33 = vmax.f32 %v788_v26, %v1888_v30  ;;  %v807_v40 = vmax.f32 %v803_v36, %v1835_v63 }
 0x2bf   : > { %v796_v35 = vmax.f32 %v792_v33, %v1890_v31  ;;  %v811_v46 = vmax.f32 %v807_v40, %v1880_v25 }
 0x2c1   : > { %v800_v38 = vmax.f32 %v796_v35, %v1865_v14 }
 0x2c3   : > { %v804_v41 = vmax.f32 %v800_v38, %v1823_v57 }
 0x2c5   : > { %v808_v44 = vmax.f32 %v804_v41, %v1843_v3 }
 0x2c7   : > { %v812_v47 = vmax.f32 %v808_v44, %v1902_v42 }
 0x2c9   : > { %v814_v49 = vmax.f32 %v811_v46, %v812_v47 }
 0x2cb   : > { %v815_v50 = vmax.f32 %v813_v48, %v814_v49 }
 0x2cd   : > { %v816_v51 = vrot.slane %v815_v50, 4 }
 0x2cf   : > { %v817_v11 = vmax.f32 %v815_v50, %v816_v51 }
 0x2d1   : > { %v818_v13 = vrot.slane %v817_v11, 2 }
 0x2d3   : > { %v819_v15 = vmax.f32 %v817_v11, %v818_v13 }
 0x2d5   : > { %v820_v17 = vrot.slane %v819_v15, 1 }
 0x2d7   : > { %v1909_v18 = vmax.f32 %v819_v15, %v820_v17 }
 0x2d9   : > { %v822_v20 = vsub.f32 %v1813_v52, %v1909_v18  ;;  %v823_v21 = vsub.f32 %v1817_v54, %v1909_v18  ;;  %v824_v22 = vsub.f32 %v1821_v56, %v1909_v18  ;;  %v825_v23 = vsub.f32 %v1825_v58, %v1909_v18 }
 0x2da   : > { %v826_v28 = vsub.f32 %v1829_v60, %v1909_v18  ;;  %v827_v32 = vsub.f32 %v1833_v62, %v1909_v18  ;;  %v828_v54 = vsub.f32 %v1839_v1, %v1909_v18  ;;  %v829_v58 = vsub.f32 %v1841_v2, %v1909_v18 }
 0x2db   : > { %v854_v24 = vmul.f32 1.442695, %v822_v20  ;;  %v856_v26 = vmul.f32 1.442695, %v823_v21  ;;  %v858_v29 = vmul.f32 1.442695, %v824_v22  ;;  %v830_v35 = vsub.f32 %v1849_v6, %v1909_v18 }
 0x2dc   : > { %v860_v52 = vmul.f32 1.442695, %v825_v23  ;;  %v862_v56 = vmul.f32 1.442695, %v826_v28  ;;  %v864_v33 = vmul.f32 1.442695, %v827_v32  ;;  %v831_v37 = vsub.f32 %v1857_v10, %v1909_v18 }
 0x2dd   : > { %1356 = vpow2.f32 %v854_v24  ;;  %v866_v62 = vmul.f32 1.442695, %v828_v54  ;;  %v868_v2 = vmul.f32 1.442695, %v829_v58  ;;  %v832_v40 = vsub.f32 %v1873_v19, %v1909_v18 }
 0x2de   : > { %1358 = vpow2.f32 %v856_v26  ;;  %v870_v6 = vmul.f32 1.442695, %v830_v35  ;;  %v833_v44 = vsub.f32 %v1888_v30, %v1909_v18  ;;  %v872_v10 = vmul.f32 1.442695, %v831_v37 }
 0x2df   : > { %1360 = vpow2.f32 %v858_v29  ;;  %v834_v47 = vsub.f32 %v1847_v5, %v1909_v18  ;;  %v874_v19 = vmul.f32 1.442695, %v832_v40  ;;  %v835_v50 = vsub.f32 %v1855_v9, %v1909_v18 }
 0x2e0   : > { %1362 = vpow2.f32 %v860_v52  ;;  %v876_v30 = vmul.f32 1.442695, %v833_v44  ;;  %v836_v13 = vsub.f32 %v1868_v16, %v1909_v18  ;;  %v837_v20 = vsub.f32 %v1890_v31, %v1909_v18 }
 0x2e1   : > { %1364 = vpow2.f32 %v862_v56  ;;  %v878_v5 = vmul.f32 1.442695, %v834_v47  ;;  %v880_v9 = vmul.f32 1.442695, %v835_v50  ;;  %v838_v23 = vsub.f32 %v1837_v0, %v1909_v18 }
 0x2e2   : > { %1366 = vpow2.f32 %v864_v33  ;;  %v882_v16 = vmul.f32 1.442695, %v836_v13  ;;  %v839_v28 = vsub.f32 %v1845_v4, %v1909_v18  ;;  %v884_v31 = vmul.f32 1.442695, %v837_v20 }
 0x2e3   : > { %v1927_v34 = vpop.eup %1356  ;;  %1368 = vpow2.f32 %v866_v62  ;;  %v840_v52 = vsub.f32 %v1853_v8, %v1909_v18  ;;  %v886_v0 = vmul.f32 1.442695, %v838_v23  ;;  %v841_v58 = vsub.f32 %v1865_v14, %v1909_v18 }
 0x2e4   : > { %v1929_v60 = vpop.eup %1358  ;;  %1370 = vpow2.f32 %v868_v2  ;;  %v888_v4 = vmul.f32 1.442695, %v839_v28  ;;  %v842_v62 = vsub.f32 %v1884_v27, %v1909_v18  ;;  %v843_v2 = vsub.f32 %v1815_v53, %v1909_v18 }
 0x2e5   : > { %v918_v36 = vadd.f32 %v1929_v60, %v1927_v34  ;;  %v1935_v1 = vpop.eup %1360  ;;  %1372 = vpow2.f32 %v870_v6  ;;  %v890_v8 = vmul.f32 1.442695, %v840_v52  ;;  %v892_v14 = vmul.f32 1.442695, %v841_v58 }
 0x2e6   : > { %v1940_v39 = vpop.eup %1362  ;;  %1374 = vpow2.f32 %v872_v10  ;;  %v844_v6 = vsub.f32 %v1819_v55, %v1909_v18  ;;  %v894_v27 = vmul.f32 1.442695, %v842_v62  ;;  %v845_v10 = vsub.f32 %v1823_v57, %v1909_v18 }
 0x2e7   : > { %v919_v38 = vadd.f32 %v1935_v1, %v918_v36  ;;  %v1945_v43 = vpop.eup %1364  ;;  %1376 = vpow2.f32 %v874_v19  ;;  %v896_v53 = vmul.f32 1.442695, %v843_v2  ;;  %v846_v19 = vsub.f32 %v1827_v59, %v1909_v18 }
 0x2e8   : > { %v1950_v46 = vpop.eup %1366  ;;  %1378 = vpow2.f32 %v876_v30  ;;  %v898_v55 = vmul.f32 1.442695, %v844_v6  ;;  %v847_v30 = vsub.f32 %v1831_v61, %v1909_v18  ;;  %v900_v57 = vmul.f32 1.442695, %v845_v10 }
 0x2e9   : > { %v920_v41 = vadd.f32 %v1940_v39, %v919_v38  ;;  %v1955_v49 = vpop.eup %1368  ;;  %1380 = vpow2.f32 %v878_v5  ;;  %v848_v5 = vsub.f32 %v1835_v63, %v1909_v18  ;;  %v902_v59 = vmul.f32 1.442695, %v846_v19 }
 0x2ea   : > { %v1960_v11 = vpop.eup %1370  ;;  %1382 = vpow2.f32 %v880_v9  ;;  %v849_v9 = vsub.f32 %v1843_v3, %v1909_v18  ;;  %v904_v61 = vmul.f32 1.442695, %v847_v30 }
 0x2eb   : > { %v921_v45 = vadd.f32 %v1945_v43, %v920_v41  ;;  %v1965_v17 = vpop.eup %1372  ;;  %1384 = vpow2.f32 %v882_v16  ;;  %v850_v16 = vsub.f32 %v1851_v7, %v1909_v18 }
 0x2ec   : > { %v1970_v22 = vpop.eup %1374  ;;  %1386 = vpow2.f32 %v884_v31  ;;  %v851_v31 = vsub.f32 %v1861_v12, %v1909_v18 }
 0x2ed   : > { %v922_v48 = vadd.f32 %v1950_v46, %v921_v45  ;;  %v1975_v26 = vpop.eup %1376  ;;  %1388 = vpow2.f32 %v886_v0  ;;  %v852_v0 = vsub.f32 %v1880_v25, %v1909_v18 }
 0x2ee   : > { %v1980_v32 = vpop.eup %1378  ;;  %1390 = vpow2.f32 %v888_v4  ;;  %v853_v4 = vsub.f32 %v1902_v42, %v1909_v18  ;;  %v912_v12 = vmul.f32 1.442695, %v851_v31 }
 0x2ef   : > { %v923_v51 = vadd.f32 %v1955_v49, %v922_v48  ;;  %v1985_v56 = vpop.eup %1380  ;;  %1392 = vpow2.f32 %v890_v8  ;;  %v914_v8 = vmul.f32 1.442695, %v852_v0 }
 0x2f0   : > { %v1990_v35 = vpop.eup %1382  ;;  %1394 = vpow2.f32 %v892_v14  ;;  %v916_v25 = vmul.f32 1.442695, %v853_v4 }
 0x2f1   : > { %v924_v15 = vadd.f32 %v1960_v11, %v923_v51  ;;  %v1995_v37 = vpop.eup %1384  ;;  %1396 = vpow2.f32 %v894_v27 }
 0x2f2   : > { %v2000_v40 = vpop.eup %1386  ;;  %1398 = vpow2.f32 %v896_v53 }
 0x2f3   : > { %v925_v21 = vadd.f32 %v1965_v17, %v924_v15  ;;  %v2005_v44 = vpop.eup %1388  ;;  %1400 = vpow2.f32 %v898_v55 }
 0x2f4   : > { %v2010_v47 = vpop.eup %1390  ;;  %1402 = vpow2.f32 %v900_v57 }
 0x2f5   : > { %v926_v24 = vadd.f32 %v1970_v22, %v925_v21  ;;  %v2015_v50 = vpop.eup %1392  ;;  %1404 = vpow2.f32 %v902_v59 }
 0x2f6   : > { %v2020_v13 = vpop.eup %1394  ;;  %1406 = vpow2.f32 %v904_v61 }
 0x2f7   : > { %v927_v29 = vadd.f32 %v1975_v26, %v926_v24  ;;  %v2025_v20 = vpop.eup %1396  ;;  %v906_v24 = vmul.f32 1.442695, %v848_v5 }
 0x2f8   : > { %v1399_v23 = vpop.eup %1398 }
 0x2f9   : > { %v928_v54 = vadd.f32 %v1980_v32, %v927_v29  ;;  %v2032_v28 = vpop.eup %1400  ;;  %v908_v29 = vmul.f32 1.442695, %v849_v9  ;;  %1408 = vpow2.f32 %v906_v24 }
 0x2fa   : > { %v2037_v52 = vpop.eup %1402 }
 0x2fb   : > { %v929_v33 = vadd.f32 %v1985_v56, %v928_v54  ;;  %v910_v54 = vmul.f32 1.442695, %v850_v16  ;;  %v2042_v58 = vpop.eup %1404  ;;  %1410 = vpow2.f32 %v908_v29 }
 0x2fc   : > { %v1407_v62 = vpop.eup %1406 }
 0x2fd   : > { %v930_v36 = vadd.f32 %v1990_v35, %v929_v33  ;;  %1412 = vpow2.f32 %v910_v54 }
 0x2fe   : > { %1414 = vpow2.f32 %v912_v12  ;;  %v992_v12 = vld [vmem:[#allocation2 + $0x40] sm:$0xff] }
 0x2ff   : > { %v931_v38 = vadd.f32 %v1995_v37, %v930_v36  ;;  %v1409_v2 = vpop.eup %1408  ;;  %1416 = vpow2.f32 %v914_v8  ;;  %v1055_v8 = vstv %s1054_s9 }
 0x300   : > { %1418 = vpow2.f32 %v916_v25 }
 0x301   : > { %v932_v41 = vadd.f32 %v2000_v40, %v931_v38  ;;  %v1411_v38 = vpop.eup %1410 }
 0x303   : > { %v933_v45 = vadd.f32 %v2005_v44, %v932_v41  ;;  %v1413_v27 = vpop.eup %1412 }
 0x304   : > { %v1415_v10 = vpop.eup %1414 }
 0x305   : > { %v934_v48 = vadd.f32 %v2010_v47, %v933_v45  ;;  %v1417_v18 = vpop.eup %1416 }
 0x306   : > { %v1419_v45 = vpop.eup %1418 }
 0x307   : > { %v935_v51 = vadd.f32 %v2015_v50, %v934_v48 }
 0x309   : > { %v936_v15 = vadd.f32 %v2020_v13, %v935_v51 }
 0x30b   : > { %v937_v21 = vadd.f32 %v2025_v20, %v936_v15 }
 0x30d   : > { %v938_v63 = vadd.f32 %v1399_v23, %v937_v21 }
 0x30f   : > { %v939_v3 = vadd.f32 %v2032_v28, %v938_v63 }
 0x311   : > { %v940_v7 = vadd.f32 %v2037_v52, %v939_v3 }
 0x313   : > { %v941_v33 = vadd.f32 %v2042_v58, %v940_v7 }
 0x315   : > { %v942_v36 = vadd.f32 %v1407_v62, %v941_v33  ;;  %v994_v33 = vld [vmem:[#allocation2 + $0x50] sm:$0xff] }
 0x317   : > { %v943_v14 = vadd.f32 %v1409_v2, %v942_v36 }
 0x319   : > { %v944_v6 = vadd.f32 %v1411_v38, %v943_v14 }
 0x31b   : > { %v945_v41 = vadd.f32 %v1413_v27, %v944_v6 }
 0x31d   : > { %v946_v42 = vadd.f32 %v1415_v10, %v945_v41  ;;  %v1061_v41 = vld [vmem:[%s1686_s17 + $0x8] sm:$0xff] }
 0x31f   : > { %v947_v53 = vadd.f32 %v1417_v18, %v946_v42 }
 0x321   : > { %v948_v19 = vadd.f32 %v1419_v45, %v947_v53 }
 0x323   : > { %v949_v55 = vrot.slane %v948_v19, 4 }
 0x325   : > { %v950_v48 = vadd.f32 %v949_v55, %v948_v19  ;;  %v1062_v19 = vld [vmem:[%s1686_s17 + $0x10] sm:$0xff] }
 0x327   : > { %v951_v30 = vrot.slane %v950_v48, 2 }
 0x329   : > { %v952_v57 = vadd.f32 %v951_v30, %v950_v48 }
 0x32b   : > { %v953_v51 = vrot.slane %v952_v57, 1 }
 0x32d   : > { %v954_v5 = vadd.f32 %v953_v51, %v952_v57 }
 0x32f   : > { %1420 = vrcp.f32 %v954_v5  ;;  %v1063_v5 = vld [vmem:[%s1686_s17 + $0x18] sm:$0xff] }
 0x335   : > { %v1421_v59 = vpop.eup %1420 }
 0x336   : > { %v971_v15 = vmul.f32 %v1421_v59, %v2000_v40  ;;  %v987_v9 = vmul.f32 %v1421_v59, %v1419_v45  ;;  %v986_v61 = vmul.f32 %v1421_v59, %v1417_v18  ;;  %v969_v21 = vmul.f32 %v1421_v59, %v1990_v35 }
 0x337   : > { %v985_v16 = vmul.f32 %v1421_v59, %v1415_v10  ;;  %v968_v24 = vmul.f32 %v1421_v59, %v1985_v56  ;;  %v984_v63 = vmul.f32 %v1421_v59, %v1413_v27  ;;  %v970_v31 = vmul.f32 %v1421_v59, %v1995_v37 }
 0x338   : > { %996 = vmatpush.msrb.mxu1 %v971_v15  ;;  %1025 = vmatpush.msrb.mxu2 %v987_v9  ;;  %v967_v29 = vmul.f32 %v1421_v59, %v1980_v32  ;;  %v983_v3 = vmul.f32 %v1421_v59, %v1411_v38  ;;  %v977_v0 = vmul.f32 %v1421_v59, %v1399_v23 }
 0x339   : > { %v976_v40 = vmul.f32 %v1421_v59, %v2025_v20  ;;  %v975_v35 = vmul.f32 %v1421_v59, %v2020_v13  ;;  %v974_v54 = vmul.f32 %v1421_v59, %v2015_v50  ;;  %v973_v56 = vmul.f32 %v1421_v59, %v2010_v47 }
 0x33a   : > { %997 = vmatpush.msrb.mxu1 %v970_v31  ;;  %1026 = vmatpush.msrb.mxu2 %v986_v61  ;;  %v972_v37 = vmul.f32 %v1421_v59, %v2005_v44  ;;  %v966_v32 = vmul.f32 %v1421_v59, %v1975_v26  ;;  %v982_v7 = vmul.f32 %v1421_v59, %v1409_v2  ;;  %v1060_v2 = vld [vmem:[%s1686_s17] sm:$0xff] }
 0x33b   : > { %v965_v23 = vmul.f32 %v1421_v59, %v1970_v22  ;;  %v981_v20 = vmul.f32 %v1421_v59, %v1407_v62  ;;  %v964_v50 = vmul.f32 %v1421_v59, %v1965_v17  ;;  %v980_v13 = vmul.f32 %v1421_v59, %v2042_v58  ;;  %v988_v58 = vld [vmem:[#allocation2 + $0x20] sm:$0xff] }
 0x33c   : > { %998 = vmatpush.msrb.mxu1 %v969_v21  ;;  %1027 = vmatpush.msrb.mxu2 %v985_v16  ;;  %v963_v44 = vmul.f32 %v1421_v59, %v1960_v11  ;;  %v979_v47 = vmul.f32 %v1421_v59, %v2037_v52  ;;  %v962_v26 = vmul.f32 %v1421_v59, %v1955_v49 }
 0x33d   : > { %v978_v4 = vmul.f32 %v1421_v59, %v2032_v28  ;;  %v961_v22 = vmul.f32 %v1421_v59, %v1950_v46  ;;  %v960_v17 = vmul.f32 %v1421_v59, %v1945_v43  ;;  %v959_v11 = vmul.f32 %v1421_v59, %v1940_v39  ;;  %v989_v28 = vld [vmem:[#allocation2 + $0x28] sm:$0xff]  ;;  %v991_v43 = vld [vmem:[#allocation2 + $0x38] sm:$0xff]  ;;  %v990_v39 = vld [vmem:[#allocation2 + $0x30] sm:$0xff] }
 0x33e   : > { %999 = vmatpush.msrb.mxu1 %v968_v24  ;;  %1028 = vmatpush.msrb.mxu2 %v984_v63  ;;  %v958_v52 = vmul.f32 %v1421_v59, %v1935_v1  ;;  %v957_v49 = vmul.f32 %v1421_v59, %v1929_v60  ;;  %v956_v46 = vmul.f32 %v1421_v59, %v1927_v34  ;;  %v993_v1 = vld [vmem:[#allocation2 + $0x48] sm:$0xff]  ;;  %v995_v60 = vld [vmem:[#allocation2 + $0x58] sm:$0xff] }
 0x340   : > { %1000 = vmatpush.msrb.mxu1 %v967_v29  ;;  %1029 = vmatpush.msrb.mxu2 %v983_v3 }
 0x342   : > { %1001 = vmatpush.msrb.mxu1 %v966_v32  ;;  %1030 = vmatpush.msrb.mxu2 %v982_v7 }
 0x344   : > { %1002 = vmatpush.msrb.mxu1 %v965_v23  ;;  %1031 = vmatpush.msrb.mxu2 %v981_v20 }
 0x346   : > { %1003 = vmatpush.msrb.mxu1 %v964_v50  ;;  %1032 = vmatpush.msrb.mxu2 %v980_v13 }
 0x348   : > { %1004 = vmatpush.msrb.mxu1 %v963_v44  ;;  %1033 = vmatpush.msrb.mxu2 %v979_v47 }
 0x34a   : > { %1005 = vmatpush.msrb.mxu1 %v962_v26  ;;  %1034 = vmatpush.msrb.mxu2 %v978_v4 }
 0x34c   : > { %1006 = vmatpush.msrb.mxu1 %v961_v22  ;;  %1035 = vmatpush.msrb.mxu2 %v977_v0 }
 0x34e   : > { %1007 = vmatpush.msrb.mxu1 %v960_v17  ;;  %1036 = vmatpush.msrb.mxu2 %v976_v40 }
 0x350   : > { %1008 = vmatpush.msrb.mxu1 %v959_v11  ;;  %1037 = vmatpush.msrb.mxu2 %v975_v35 }
 0x352   : > { %1009 = vmatpush.msrb.mxu1 %v958_v52  ;;  %1038 = vmatpush.msrb.mxu2 %v974_v54 }
 0x354   : > { %1010 = vmatpush.msrb.mxu1 %v957_v49  ;;  %1039 = vmatpush.msrb.mxu2 %v973_v56 }
 0x356   : > { %1011 = vmatpush.msrb.mxu1 %v956_v46  ;;  %1040 = vmatpush.msrb.mxu2 %v972_v37 }
 0x357   : > { %1041 = vmatmul.f32.vlgmr.msrb.gmra.mxu2 %v989_v28  ;;  %1012 = vmatmul.f32.vlgmr.msrb.gmra.mxu1 %v988_v58 }
 0x35f   : > { %1044 = vmatmul.f32.gmra.mxu2 %v991_v43  ;;  %1015 = vmatmul.f32.gmra.mxu1 %v990_v39 }
 0x367   : > { %1047 = vmatmul.f32.gmra.mxu2 %v993_v1  ;;  %1018 = vmatmul.f32.gmra.mxu1 %v992_v12 }
 0x36f   : > { %1050 = vmatmul.f32.gmra.mxu2 %v995_v60  ;;  %1021 = vmatmul.f32.gmra.mxu1 %v994_v33 }
 0x3d4   : > { %v1013_v34 = vpop.f32.mrf.mxu1 }
 0x3da   : > { %v1042_v62 = vpop.f32.mrf.mxu2 }
 0x3db   : > { %v1043_v36 = vadd.f32 %v1042_v62, %v1013_v34 }
 0x3dc   : > { %v1016_v25 = vpop.f32.mrf.mxu1 }
 0x3dd   : > { %v1056_v14 = vmul.f32 %v1055_v8, %v1043_v36 }
 0x3df   : > { %v1064_v38 = vadd.f32 %v1060_v2, %v1056_v14 }
 0x3e1   : > { %1068 = vst [vmem:[%s1697_s19] sm:$0xff] %v1064_v38 }
 0x3e2   : > { %v1045_v6 = vpop.f32.mrf.mxu2 }
 0x3e3   : > { %v1046_v27 = vadd.f32 %v1045_v6, %v1016_v25 }
 0x3e4   : > { %v1019_v42 = vpop.f32.mrf.mxu1 }
 0x3e5   : > { %v1057_v10 = vmul.f32 %v1055_v8, %v1046_v27 }
 0x3e7   : > { %v1065_v18 = vadd.f32 %v1061_v41, %v1057_v10 }
 0x3e9   : > { %1069 = vst [vmem:[%s1697_s19 + $0x8] sm:$0xff] %v1065_v18 }
 0x3ea   : > { %v1048_v53 = vpop.f32.mrf.mxu2 }
 0x3eb   : > { %v1049_v45 = vadd.f32 %v1048_v53, %v1019_v42 }
 0x3ec   : > { %v1022_v30 = vpop.f32.mrf.mxu1 }
 0x3ed   : > { %v1058_v55 = vmul.f32 %v1055_v8, %v1049_v45 }
 0x3ef   : > { %v1066_v48 = vadd.f32 %v1062_v19, %v1058_v55 }
 0x3f1   : > { %1070 = vst [vmem:[%s1697_s19 + $0x10] sm:$0xff] %v1066_v48 }
 0x3f2   : > { %v1051_v57 = vpop.f32.mrf.mxu2 }
 0x3f3   : > { %v1052_v51 = vadd.f32 %v1051_v57, %v1022_v30 }
 0x3f5   : > { %v1059_v59 = vmul.f32 %v1055_v8, %v1052_v51 }
 0x3f7   : > { %v1067_v15 = vadd.f32 %v1063_v5, %v1059_v59 }
 0x3f9   : > { %1071 = vst [vmem:[%s1697_s19 + $0x18] sm:$0xff] %v1067_v15 }
 0x3fa   : > { %1479 = shalt.err (!%p1476_p0)
}
 0x3fb   : > { %s1556_s16 = smov 128   ;;  %s1557_s19 = smov 256  }
 0x3fc   : > { %s1558_s9 = smov 8  }
 0x3fd   : > { %1269 = dma.vmem_to_hbm [thread:$0]  (%p1657_p9), %s1087_s30, 512, %s1089_s24, %s1073_s23, %s1556_s16, %s1557_s19, %s1558_s9  }
 0x3fe PF: > { %p1280_p1 = scmp.ge.s32.totalorder %s1550_s27, 2  ;;  %s1103_s0 = sand.u32 1, %s1522_s20  }
 0x3ff   : > { %s1104_s28 = scalar_lea.sflag [#allocation7], %s1103_s0 }
 0x400   : > { %p1276_p2 = pnand %p1280_p1, %p1663_p12 }
 0x402   : > { %p1277_p4 = pneg %p1276_p2 }
 0x404   : > { %1517 = dma.done.wait (%p1277_p4), %s1104_s28, 512  }
 0x405   : > { %1519 = vsyncadd (%p1277_p4), %s1104_s28, 4294966784  ;;  %s22_s27 = sadd.s32 1, %s1550_s27   ;;  %s2141_s7 = sld [smem:[#allocation11_spill]] }
 0x406   : > { %p19_p3 = scmp.ge.s32.totalorder %s22_s27, 6   ;;  %s2142_s22 = sld [smem:[#allocation14_spill]] }
 0x407   : > { %s2143_s10 = sld [smem:[#allocation12_spill]]  ;;  %s2145_s20 = smov %s1526_s21 }
 0x408   : > { %s2144_s11 = sld [smem:[#allocation13_spill]]  ;;  %s2147_s23 = smov %s1542_s25 }
 0x409   : > { %s2148_s24 = smov %s1546_s26 }
 0x40a   :  { %21 = sbr.rel (!%p19_p3) target bundleno = 9 (0x9), region = 93 }
 0x40b   : > { %s2146_s21 = smov %s2141_s7 }
 0x40d   : > { %s2149_s25 = smov %s2143_s10 }
 0x40e   : > { %s2150_s26 = smov %s2144_s11 }
 0x40f   :  { %1110 = vsyncpa [#allocation6], 1 }
 0x410   :  { %1112 = vsyncpa [#allocation6 + $0x1], 1 }
 0x411   :  { %1113 = vsyncpa [#allocation7], 1 }
 0x412   :  { %1115 = vsyncpa [#allocation7 + $0x1], 1 }

</bundles_post_ra>
